<compile_context>
chip_gen: v6e
topology: v6e:2x2x1
jax: 0.10.0
libtpu: 0.0.40
codegen_flags: <defaults>
</compile_context>

<pallas_src>
import math
import functools

import jax
import jax.numpy as jnp
from jax import lax
from jax.experimental import pallas as pl
from jax.experimental.pallas import tpu as pltpu


# ----------------------------- Pallas kernel -----------------------------

def _mha_kernel(q_ref, k_ref, v_ref, m_ref,
                wq_ref, wk_ref, wv_ref, wo_ref,
                bq_ref, bk_ref, bv_ref, bo_ref,
                o_ref, *, n_heads, scale):
    """Fused multi-head attention for one (batch, query-tile) grid cell."""
    xq = q_ref[0]          # (tq, D)
    xk = k_ref[0]          # (Tk, D)
    xv = v_ref[0]          # (Tk, D)
    mask = m_ref[0]        # (Tm, Tk) with Tm in {1, tq}

    # Input projections: full-width (D-wide) matmuls, MXU friendly, stay in VMEM.
    q = jnp.dot(xq, wq_ref[...], preferred_element_type=jnp.float32) + bq_ref[...]
    k = jnp.dot(xk, wk_ref[...], preferred_element_type=jnp.float32) + bk_ref[...]
    v = jnp.dot(xv, wv_ref[...], preferred_element_type=jnp.float32) + bv_ref[...]

    tq, D = q.shape
    dk = D // n_heads
    neg_inf = jnp.float32(-1e9)

    # Per-head attention.  Heads are column slices of the lane-dense (rows, D)
    # projections; the output projection is folded into the loop so the only
    # store is one lane-dense (tq, D) slab.
    acc = jnp.zeros((tq, D), jnp.float32)
    for h in range(n_heads):
        lo = h * dk
        qh = q[:, lo:lo + dk]                       # (tq, dk)
        kh = k[:, lo:lo + dk]                       # (Tk, dk)
        vh = v[:, lo:lo + dk]                       # (Tk, dk)
        # scores = qh @ kh^T / sqrt(dk)  (contract last axes; no transpose)
        s = lax.dot_general(qh, kh, (((1,), (1,)), ((), ())),
                            preferred_element_type=jnp.float32) * scale
        s = jnp.where(mask == 0, neg_inf, s)        # masked_fill(mask == 0, -1e9)
        m = jnp.max(s, axis=-1, keepdims=True)
        e = jnp.exp(s - m)
        denom = jnp.sum(e, axis=-1, keepdims=True)
        p = e * pl.reciprocal(denom, approx=False)  # softmax(dim=-1)
        # TODO(synk): training-mode dropout on `p` (pltpu.prng_*) not implemented;
        # eval-mode dropout is identity, matching the reference semantics here.
        ctx_h = jnp.dot(p, vh, preferred_element_type=jnp.float32)    # (tq, dk)
        # ctx @ W_o  ==  sum_h ctx_h @ W_o[h*dk:(h+1)*dk, :]
        acc = acc + jnp.dot(ctx_h, wo_ref[lo:lo + dk, :],
                            preferred_element_type=jnp.float32)
    o_ref[0] = acc + bo_ref[...]


# ----------------------------- wrapper -----------------------------

def _pick_q_tile(t, max_tile=256):
    if t <= max_tile:
        return t
    for cand in (256, 128, 64, 32, 16, 8):
        if t % cand == 0:
            return cand
    return t


def multi_head_attention(query, key, value, mask, params, n_heads):
    """query: (B, Tq, D), key/value: (B, Tk, D), mask: None | (B, 1, Tk) | (B, Tq, Tk)."""
    B, Tq, D = query.shape
    Tk = key.shape[1]
    assert D % n_heads == 0
    dk = D // n_heads

    if mask is None:
        mask = jnp.ones((B, 1, Tk), jnp.float32)
    mask = mask.astype(jnp.float32)
    Tm = mask.shape[1]
    assert Tm in (1, Tq), "mask must broadcast over queries or match Tq"

    tq = _pick_q_tile(Tq)
    grid = (B, Tq // tq)

    if Tm == 1:
        mask_spec = pl.BlockSpec((1, 1, Tk), lambda b, i: (b, 0, 0))
    else:
        mask_spec = pl.BlockSpec((1, tq, Tk), lambda b, i: (b, i, 0))

    w_spec = pl.BlockSpec((D, D), lambda b, i: (0, 0))
    b_spec = pl.BlockSpec((1, D), lambda b, i: (0, 0))

    kernel = functools.partial(_mha_kernel, n_heads=n_heads,
                               scale=1.0 / math.sqrt(dk))

    return pl.pallas_call(
        kernel,
        out_shape=jax.ShapeDtypeStruct((B, Tq, D), jnp.float32),
        grid=grid,
        in_specs=[
            pl.BlockSpec((1, tq, D), lambda b, i: (b, i, 0)),   # query tile
            pl.BlockSpec((1, Tk, D), lambda b, i: (b, 0, 0)),   # key   (resident over i)
            pl.BlockSpec((1, Tk, D), lambda b, i: (b, 0, 0)),   # value (resident over i)
            mask_spec,                                          # (B, Tm, Tk), no head broadcast
            w_spec, w_spec, w_spec, w_spec,                     # wq, wk, wv, wo
            b_spec, b_spec, b_spec, b_spec,                     # bq, bk, bv, bo
        ],
        out_specs=pl.BlockSpec((1, tq, D), lambda b, i: (b, i, 0)),
        compiler_params=pltpu.CompilerParams(
            dimension_semantics=("parallel", "parallel")),
    )(query, key, value, mask,
      params["wq"], params["wk"], params["wv"], params["wo"],
      params["bq"].reshape(1, D), params["bk"].reshape(1, D),
      params["bv"].reshape(1, D), params["bo"].reshape(1, D))


# ----------------------------- pure-JAX reference -----------------------------

def mha_reference(query, key, value, mask, params, n_heads):
    B, Tq, D = query.shape
    dk = D // n_heads

    def proj(x, w, b):
        return (x @ w + b).reshape(B, -1, n_heads, dk).transpose(0, 2, 1, 3)

    q = proj(query, params["wq"], params["bq"])
    k = proj(key, params["wk"], params["bk"])
    v = proj(value, params["wv"], params["bv"])
    scores = jnp.einsum("bhqd,bhkd->bhqk", q, k) / math.sqrt(dk)
    if mask is not None:
        scores = jnp.where(mask[:, None, :, :] == 0, -1e9, scores)
    p = jax.nn.softmax(scores, axis=-1)
    ctx = jnp.einsum("bhqk,bhkd->bhqd", p, v)
    ctx = ctx.transpose(0, 2, 1, 3).reshape(B, Tq, D)
    return ctx @ params["wo"] + params["bo"]


# ----------------------------- parameters -----------------------------

def init_params(key, d_model):
    ks = jax.random.split(key, 8)
    s = 1.0 / math.sqrt(d_model)

    def w(k):
        return jax.random.normal(k, (d_model, d_model), jnp.float32) * s

    def b(k):
        return jax.random.normal(k, (d_model,), jnp.float32) * 0.02

    return {"wq": w(ks[0]), "bq": b(ks[1]),
            "wk": w(ks[2]), "bk": b(ks[3]),
            "wv": w(ks[4]), "bv": b(ks[5]),
            "wo": w(ks[6]), "bo": b(ks[7])}


# ----------------------------- main -----------------------------

if __name__ == "__main__":
    B, Tq, Tk, d_model, n_heads = 2, 8, 8, 32, 4

    root = jax.random.PRNGKey(0)
    kp, kq, kk, kv = jax.random.split(root, 4)
    params = init_params(kp, d_model)

    query = jax.random.normal(kq, (B, Tq, d_model), jnp.float32)
    key_t = jax.random.normal(kk, (B, Tk, d_model), jnp.float32)
    value = jax.random.normal(kv, (B, Tk, d_model), jnp.float32)

    # Case 1: padding-style mask (B, 1, Tk), distinct q / k / v (cross-attention).
    lengths = jnp.array([Tk, Tk - 3], jnp.int32)
    pad_mask = (jnp.arange(Tk)[None, :] < lengths[:, None]
                ).astype(jnp.float32)[:, None, :]
    out1 = jax.block_until_ready(
        multi_head_attention(query, key_t, value, pad_mask, params, n_heads))
    ref1 = mha_reference(query, key_t, value, pad_mask, params, n_heads)
    assert out1.shape == (B, Tq, d_model), out1.shape
    assert bool(jnp.all(jnp.isfinite(out1)))
    assert bool(jnp.allclose(out1, ref1, atol=1e-4, rtol=1e-4)), \
        float(jnp.max(jnp.abs(out1 - ref1)))

    # Case 2: causal mask (B, Tq, Tq), self-attention.
    causal = jnp.broadcast_to(
        jnp.tril(jnp.ones((Tq, Tq), jnp.float32))[None], (B, Tq, Tq))
    out2 = jax.block_until_ready(
        multi_head_attention(query, query, query, causal, params, n_heads))
    ref2 = mha_reference(query, query, query, causal, params, n_heads)
    assert bool(jnp.allclose(out2, ref2, atol=1e-4, rtol=1e-4)), \
        float(jnp.max(jnp.abs(out2 - ref2)))

    print("KERNEL_OK")
</pallas_src>

<mosaic_0001>
module attributes {stable_mosaic.version = 11 : i64} {
  func.func @_mha_kernel(%arg0: i32, %arg1: i32, %arg2: memref<1x8x32xf32, #tpu.memory_space<vmem>>, %arg3: memref<1x8x32xf32, #tpu.memory_space<vmem>>, %arg4: memref<1x8x32xf32, #tpu.memory_space<vmem>>, %arg5: memref<1x1x8xf32, #tpu.memory_space<vmem>>, %arg6: memref<32x32xf32, #tpu.memory_space<vmem>>, %arg7: memref<32x32xf32, #tpu.memory_space<vmem>>, %arg8: memref<32x32xf32, #tpu.memory_space<vmem>>, %arg9: memref<32x32xf32, #tpu.memory_space<vmem>>, %arg10: memref<1x32xf32, #tpu.memory_space<vmem>>, %arg11: memref<1x32xf32, #tpu.memory_space<vmem>>, %arg12: memref<1x32xf32, #tpu.memory_space<vmem>>, %arg13: memref<1x32xf32, #tpu.memory_space<vmem>>, %arg14: memref<1x8x32xf32, #tpu.memory_space<vmem>>) attributes {dimension_semantics = [#tpu.dimension_semantics<parallel>, #tpu.dimension_semantics<parallel>], iteration_bounds = array<i64: 2, 1>, scalar_prefetch = 0 : i64, scratch_operands = 0 : i64, tpu.core_type = #tpu.core_type<tc>, window_params = [{transform_indices = @transform_0, window_bounds = array<i64: 1, 8, 32>}, {transform_indices = @transform_1, window_bounds = array<i64: 1, 8, 32>}, {transform_indices = @transform_2, window_bounds = array<i64: 1, 8, 32>}, {transform_indices = @transform_3, window_bounds = array<i64: 1, 1, 8>}, {pipeline_mode = #tpu.pipeline_mode<synchronous>, transform_indices = @transform_4, window_bounds = array<i64: 32, 32>}, {pipeline_mode = #tpu.pipeline_mode<synchronous>, transform_indices = @transform_5, window_bounds = array<i64: 32, 32>}, {pipeline_mode = #tpu.pipeline_mode<synchronous>, transform_indices = @transform_6, window_bounds = array<i64: 32, 32>}, {pipeline_mode = #tpu.pipeline_mode<synchronous>, transform_indices = @transform_7, window_bounds = array<i64: 32, 32>}, {pipeline_mode = #tpu.pipeline_mode<synchronous>, transform_indices = @transform_8, window_bounds = array<i64: 1, 32>}, {pipeline_mode = #tpu.pipeline_mode<synchronous>, transform_indices = @transform_9, window_bounds = array<i64: 1, 32>}, {pipeline_mode = #tpu.pipeline_mode<synchronous>, transform_indices = @transform_10, window_bounds = array<i64: 1, 32>}, {pipeline_mode = #tpu.pipeline_mode<synchronous>, transform_indices = @transform_11, window_bounds = array<i64: 1, 32>}, {transform_indices = @transform_12, window_bounds = array<i64: 1, 8, 32>}]} {
    %c0 = arith.constant 0 : index
    %c0_0 = arith.constant 0 : index
    %c0_1 = arith.constant 0 : index
    %0 = vector.load %arg2[%c0, %c0_0, %c0_1] : memref<1x8x32xf32, #tpu.memory_space<vmem>>, vector<1x8x32xf32>
    %1 = vector.shape_cast %0 : vector<1x8x32xf32> to vector<8x32xf32>
    %c0_2 = arith.constant 0 : index
    %c0_3 = arith.constant 0 : index
    %c0_4 = arith.constant 0 : index
    %2 = vector.load %arg3[%c0_2, %c0_3, %c0_4] : memref<1x8x32xf32, #tpu.memory_space<vmem>>, vector<1x8x32xf32>
    %3 = vector.shape_cast %2 : vector<1x8x32xf32> to vector<8x32xf32>
    %c0_5 = arith.constant 0 : index
    %c0_6 = arith.constant 0 : index
    %c0_7 = arith.constant 0 : index
    %4 = vector.load %arg4[%c0_5, %c0_6, %c0_7] : memref<1x8x32xf32, #tpu.memory_space<vmem>>, vector<1x8x32xf32>
    %5 = vector.shape_cast %4 : vector<1x8x32xf32> to vector<8x32xf32>
    %c0_8 = arith.constant 0 : index
    %c0_9 = arith.constant 0 : index
    %c0_10 = arith.constant 0 : index
    %6 = vector.load %arg5[%c0_8, %c0_9, %c0_10] : memref<1x1x8xf32, #tpu.memory_space<vmem>>, vector<1x1x8xf32>
    %7 = vector.shape_cast %6 : vector<1x1x8xf32> to vector<1x8xf32>
    %c0_11 = arith.constant 0 : index
    %c0_12 = arith.constant 0 : index
    %8 = vector.load %arg6[%c0_11, %c0_12] : memref<32x32xf32, #tpu.memory_space<vmem>>, vector<32x32xf32>
    %cst = arith.constant dense<0.000000e+00> : vector<8x32xf32>
    %9 = tpu.matmul %1, %8, %cst {dimension_numbers = #tpu.dot_dimension_numbers<[1], [0], [0], [1], [0, 0, 1, 1], [], []>} : vector<8x32xf32>, vector<32x32xf32>, vector<8x32xf32> -> vector<8x32xf32>
    %c0_13 = arith.constant 0 : index
    %c0_14 = arith.constant 0 : index
    %10 = vector.load %arg10[%c0_13, %c0_14] : memref<1x32xf32, #tpu.memory_space<vmem>>, vector<1x32xf32>
    %11 = vector.broadcast %10 : vector<1x32xf32> to vector<8x32xf32>
    %12 = arith.addf %9, %11 : vector<8x32xf32>
    %c0_15 = arith.constant 0 : index
    %c0_16 = arith.constant 0 : index
    %13 = vector.load %arg7[%c0_15, %c0_16] : memref<32x32xf32, #tpu.memory_space<vmem>>, vector<32x32xf32>
    %cst_17 = arith.constant dense<0.000000e+00> : vector<8x32xf32>
    %14 = tpu.matmul %3, %13, %cst_17 {dimension_numbers = #tpu.dot_dimension_numbers<[1], [0], [0], [1], [0, 0, 1, 1], [], []>} : vector<8x32xf32>, vector<32x32xf32>, vector<8x32xf32> -> vector<8x32xf32>
    %c0_18 = arith.constant 0 : index
    %c0_19 = arith.constant 0 : index
    %15 = vector.load %arg11[%c0_18, %c0_19] : memref<1x32xf32, #tpu.memory_space<vmem>>, vector<1x32xf32>
    %16 = vector.broadcast %15 : vector<1x32xf32> to vector<8x32xf32>
    %17 = arith.addf %14, %16 : vector<8x32xf32>
    %c0_20 = arith.constant 0 : index
    %c0_21 = arith.constant 0 : index
    %18 = vector.load %arg8[%c0_20, %c0_21] : memref<32x32xf32, #tpu.memory_space<vmem>>, vector<32x32xf32>
    %cst_22 = arith.constant dense<0.000000e+00> : vector<8x32xf32>
    %19 = tpu.matmul %5, %18, %cst_22 {dimension_numbers = #tpu.dot_dimension_numbers<[1], [0], [0], [1], [0, 0, 1, 1], [], []>} : vector<8x32xf32>, vector<32x32xf32>, vector<8x32xf32> -> vector<8x32xf32>
    %c0_23 = arith.constant 0 : index
    %c0_24 = arith.constant 0 : index
    %20 = vector.load %arg12[%c0_23, %c0_24] : memref<1x32xf32, #tpu.memory_space<vmem>>, vector<1x32xf32>
    %21 = vector.broadcast %20 : vector<1x32xf32> to vector<8x32xf32>
    %22 = arith.addf %19, %21 : vector<8x32xf32>
    %cst_25 = arith.constant 0.000000e+00 : f32
    %23 = vector.broadcast %cst_25 : f32 to vector<8x32xf32>
    %24 = vector.extract_strided_slice %12 {offsets = [0, 0], sizes = [8, 8], strides = [1, 1]} : vector<8x32xf32> to vector<8x8xf32>
    %25 = vector.extract_strided_slice %17 {offsets = [0, 0], sizes = [8, 8], strides = [1, 1]} : vector<8x32xf32> to vector<8x8xf32>
    %26 = vector.extract_strided_slice %22 {offsets = [0, 0], sizes = [8, 8], strides = [1, 1]} : vector<8x32xf32> to vector<8x8xf32>
    %cst_26 = arith.constant dense<0.000000e+00> : vector<8x8xf32>
    %27 = tpu.matmul %24, %25, %cst_26 {dimension_numbers = #tpu.dot_dimension_numbers<[1], [1], [0], [0], [0, 0, 1, 0], [], []>} : vector<8x8xf32>, vector<8x8xf32>, vector<8x8xf32> -> vector<8x8xf32>
    %cst_27 = arith.constant 0.353553385 : f32
    %28 = vector.broadcast %cst_27 : f32 to vector<8x8xf32>
    %29 = arith.mulf %27, %28 : vector<8x8xf32>
    %cst_28 = arith.constant 0.000000e+00 : f32
    %30 = vector.broadcast %cst_28 : f32 to vector<1x8xf32>
    %31 = arith.cmpf oeq, %7, %30 : vector<1x8xf32>
    %cst_29 = arith.constant -1.000000e+09 : f32
    %32 = vector.shape_cast %31 : vector<1x8xi1> to vector<1x8xi1>
    %33 = vector.broadcast %32 : vector<1x8xi1> to vector<8x8xi1>
    %34 = vector.broadcast %cst_29 : f32 to vector<8x8xf32>
    %35 = arith.select %33, %34, %29 : vector<8x8xi1>, vector<8x8xf32>
    %cst_30 = arith.constant dense<0xFF800000> : vector<8xf32>
    %36 = vector.multi_reduction <maximumf>, %35, %cst_30 [1] : vector<8x8xf32> to vector<8xf32>
    %37 = vector.shape_cast %36 : vector<8xf32> to vector<8x1xf32>
    %38 = vector.broadcast %37 : vector<8x1xf32> to vector<8x8xf32>
    %39 = arith.subf %35, %38 : vector<8x8xf32>
    %40 = math.exp %39 : vector<8x8xf32>
    %cst_31 = arith.constant dense<0.000000e+00> : vector<8xf32>
    %41 = vector.multi_reduction <add>, %40, %cst_31 [1] : vector<8x8xf32> to vector<8xf32>
    %42 = vector.shape_cast %41 : vector<8xf32> to vector<8x1xf32>
    %43 = tpu.reciprocal %42 : vector<8x1xf32> -> vector<8x1xf32>
    %44 = vector.broadcast %43 : vector<8x1xf32> to vector<8x8xf32>
    %45 = arith.mulf %40, %44 : vector<8x8xf32>
    %cst_32 = arith.constant dense<0.000000e+00> : vector<8x8xf32>
    %46 = tpu.matmul %45, %26, %cst_32 {dimension_numbers = #tpu.dot_dimension_numbers<[1], [0], [0], [1], [0, 0, 1, 1], [], []>} : vector<8x8xf32>, vector<8x8xf32>, vector<8x8xf32> -> vector<8x8xf32>
    %c0_33 = arith.constant 0 : index
    %c0_34 = arith.constant 0 : index
    %47 = vector.load %arg9[%c0_33, %c0_34] : memref<32x32xf32, #tpu.memory_space<vmem>>, vector<8x32xf32>
    %cst_35 = arith.constant dense<0.000000e+00> : vector<8x32xf32>
    %48 = tpu.matmul %46, %47, %cst_35 {dimension_numbers = #tpu.dot_dimension_numbers<[1], [0], [0], [1], [0, 0, 1, 1], [], []>} : vector<8x8xf32>, vector<8x32xf32>, vector<8x32xf32> -> vector<8x32xf32>
    %49 = arith.addf %23, %48 : vector<8x32xf32>
    %50 = vector.extract_strided_slice %12 {offsets = [0, 8], sizes = [8, 8], strides = [1, 1]} : vector<8x32xf32> to vector<8x8xf32>
    %51 = vector.extract_strided_slice %17 {offsets = [0, 8], sizes = [8, 8], strides = [1, 1]} : vector<8x32xf32> to vector<8x8xf32>
    %52 = vector.extract_strided_slice %22 {offsets = [0, 8], sizes = [8, 8], strides = [1, 1]} : vector<8x32xf32> to vector<8x8xf32>
    %cst_36 = arith.constant dense<0.000000e+00> : vector<8x8xf32>
    %53 = tpu.matmul %50, %51, %cst_36 {dimension_numbers = #tpu.dot_dimension_numbers<[1], [1], [0], [0], [0, 0, 1, 0], [], []>} : vector<8x8xf32>, vector<8x8xf32>, vector<8x8xf32> -> vector<8x8xf32>
    %cst_37 = arith.constant 0.353553385 : f32
    %54 = vector.broadcast %cst_37 : f32 to vector<8x8xf32>
    %55 = arith.mulf %53, %54 : vector<8x8xf32>
    %cst_38 = arith.constant 0.000000e+00 : f32
    %56 = vector.broadcast %cst_38 : f32 to vector<1x8xf32>
    %57 = arith.cmpf oeq, %7, %56 : vector<1x8xf32>
    %cst_39 = arith.constant -1.000000e+09 : f32
    %58 = vector.shape_cast %57 : vector<1x8xi1> to vector<1x8xi1>
    %59 = vector.broadcast %58 : vector<1x8xi1> to vector<8x8xi1>
    %60 = vector.broadcast %cst_39 : f32 to vector<8x8xf32>
    %61 = arith.select %59, %60, %55 : vector<8x8xi1>, vector<8x8xf32>
    %cst_40 = arith.constant dense<0xFF800000> : vector<8xf32>
    %62 = vector.multi_reduction <maximumf>, %61, %cst_40 [1] : vector<8x8xf32> to vector<8xf32>
    %63 = vector.shape_cast %62 : vector<8xf32> to vector<8x1xf32>
    %64 = vector.broadcast %63 : vector<8x1xf32> to vector<8x8xf32>
    %65 = arith.subf %61, %64 : vector<8x8xf32>
    %66 = math.exp %65 : vector<8x8xf32>
    %cst_41 = arith.constant dense<0.000000e+00> : vector<8xf32>
    %67 = vector.multi_reduction <add>, %66, %cst_41 [1] : vector<8x8xf32> to vector<8xf32>
    %68 = vector.shape_cast %67 : vector<8xf32> to vector<8x1xf32>
    %69 = tpu.reciprocal %68 : vector<8x1xf32> -> vector<8x1xf32>
    %70 = vector.broadcast %69 : vector<8x1xf32> to vector<8x8xf32>
    %71 = arith.mulf %66, %70 : vector<8x8xf32>
    %cst_42 = arith.constant dense<0.000000e+00> : vector<8x8xf32>
    %72 = tpu.matmul %71, %52, %cst_42 {dimension_numbers = #tpu.dot_dimension_numbers<[1], [0], [0], [1], [0, 0, 1, 1], [], []>} : vector<8x8xf32>, vector<8x8xf32>, vector<8x8xf32> -> vector<8x8xf32>
    %c8 = arith.constant 8 : index
    %c0_43 = arith.constant 0 : index
    %73 = vector.load %arg9[%c8, %c0_43] : memref<32x32xf32, #tpu.memory_space<vmem>>, vector<8x32xf32>
    %cst_44 = arith.constant dense<0.000000e+00> : vector<8x32xf32>
    %74 = tpu.matmul %72, %73, %cst_44 {dimension_numbers = #tpu.dot_dimension_numbers<[1], [0], [0], [1], [0, 0, 1, 1], [], []>} : vector<8x8xf32>, vector<8x32xf32>, vector<8x32xf32> -> vector<8x32xf32>
    %75 = arith.addf %49, %74 : vector<8x32xf32>
    %76 = vector.extract_strided_slice %12 {offsets = [0, 16], sizes = [8, 8], strides = [1, 1]} : vector<8x32xf32> to vector<8x8xf32>
    %77 = vector.extract_strided_slice %17 {offsets = [0, 16], sizes = [8, 8], strides = [1, 1]} : vector<8x32xf32> to vector<8x8xf32>
    %78 = vector.extract_strided_slice %22 {offsets = [0, 16], sizes = [8, 8], strides = [1, 1]} : vector<8x32xf32> to vector<8x8xf32>
    %cst_45 = arith.constant dense<0.000000e+00> : vector<8x8xf32>
    %79 = tpu.matmul %76, %77, %cst_45 {dimension_numbers = #tpu.dot_dimension_numbers<[1], [1], [0], [0], [0, 0, 1, 0], [], []>} : vector<8x8xf32>, vector<8x8xf32>, vector<8x8xf32> -> vector<8x8xf32>
    %cst_46 = arith.constant 0.353553385 : f32
    %80 = vector.broadcast %cst_46 : f32 to vector<8x8xf32>
    %81 = arith.mulf %79, %80 : vector<8x8xf32>
    %cst_47 = arith.constant 0.000000e+00 : f32
    %82 = vector.broadcast %cst_47 : f32 to vector<1x8xf32>
    %83 = arith.cmpf oeq, %7, %82 : vector<1x8xf32>
    %cst_48 = arith.constant -1.000000e+09 : f32
    %84 = vector.shape_cast %83 : vector<1x8xi1> to vector<1x8xi1>
    %85 = vector.broadcast %84 : vector<1x8xi1> to vector<8x8xi1>
    %86 = vector.broadcast %cst_48 : f32 to vector<8x8xf32>
    %87 = arith.select %85, %86, %81 : vector<8x8xi1>, vector<8x8xf32>
    %cst_49 = arith.constant dense<0xFF800000> : vector<8xf32>
    %88 = vector.multi_reduction <maximumf>, %87, %cst_49 [1] : vector<8x8xf32> to vector<8xf32>
    %89 = vector.shape_cast %88 : vector<8xf32> to vector<8x1xf32>
    %90 = vector.broadcast %89 : vector<8x1xf32> to vector<8x8xf32>
    %91 = arith.subf %87, %90 : vector<8x8xf32>
    %92 = math.exp %91 : vector<8x8xf32>
    %cst_50 = arith.constant dense<0.000000e+00> : vector<8xf32>
    %93 = vector.multi_reduction <add>, %92, %cst_50 [1] : vector<8x8xf32> to vector<8xf32>
    %94 = vector.shape_cast %93 : vector<8xf32> to vector<8x1xf32>
    %95 = tpu.reciprocal %94 : vector<8x1xf32> -> vector<8x1xf32>
    %96 = vector.broadcast %95 : vector<8x1xf32> to vector<8x8xf32>
    %97 = arith.mulf %92, %96 : vector<8x8xf32>
    %cst_51 = arith.constant dense<0.000000e+00> : vector<8x8xf32>
    %98 = tpu.matmul %97, %78, %cst_51 {dimension_numbers = #tpu.dot_dimension_numbers<[1], [0], [0], [1], [0, 0, 1, 1], [], []>} : vector<8x8xf32>, vector<8x8xf32>, vector<8x8xf32> -> vector<8x8xf32>
    %c16 = arith.constant 16 : index
    %c0_52 = arith.constant 0 : index
    %99 = vector.load %arg9[%c16, %c0_52] : memref<32x32xf32, #tpu.memory_space<vmem>>, vector<8x32xf32>
    %cst_53 = arith.constant dense<0.000000e+00> : vector<8x32xf32>
    %100 = tpu.matmul %98, %99, %cst_53 {dimension_numbers = #tpu.dot_dimension_numbers<[1], [0], [0], [1], [0, 0, 1, 1], [], []>} : vector<8x8xf32>, vector<8x32xf32>, vector<8x32xf32> -> vector<8x32xf32>
    %101 = arith.addf %75, %100 : vector<8x32xf32>
    %102 = vector.extract_strided_slice %12 {offsets = [0, 24], sizes = [8, 8], strides = [1, 1]} : vector<8x32xf32> to vector<8x8xf32>
    %103 = vector.extract_strided_slice %17 {offsets = [0, 24], sizes = [8, 8], strides = [1, 1]} : vector<8x32xf32> to vector<8x8xf32>
    %104 = vector.extract_strided_slice %22 {offsets = [0, 24], sizes = [8, 8], strides = [1, 1]} : vector<8x32xf32> to vector<8x8xf32>
    %cst_54 = arith.constant dense<0.000000e+00> : vector<8x8xf32>
    %105 = tpu.matmul %102, %103, %cst_54 {dimension_numbers = #tpu.dot_dimension_numbers<[1], [1], [0], [0], [0, 0, 1, 0], [], []>} : vector<8x8xf32>, vector<8x8xf32>, vector<8x8xf32> -> vector<8x8xf32>
    %cst_55 = arith.constant 0.353553385 : f32
    %106 = vector.broadcast %cst_55 : f32 to vector<8x8xf32>
    %107 = arith.mulf %105, %106 : vector<8x8xf32>
    %cst_56 = arith.constant 0.000000e+00 : f32
    %108 = vector.broadcast %cst_56 : f32 to vector<1x8xf32>
    %109 = arith.cmpf oeq, %7, %108 : vector<1x8xf32>
    %cst_57 = arith.constant -1.000000e+09 : f32
    %110 = vector.shape_cast %109 : vector<1x8xi1> to vector<1x8xi1>
    %111 = vector.broadcast %110 : vector<1x8xi1> to vector<8x8xi1>
    %112 = vector.broadcast %cst_57 : f32 to vector<8x8xf32>
    %113 = arith.select %111, %112, %107 : vector<8x8xi1>, vector<8x8xf32>
    %cst_58 = arith.constant dense<0xFF800000> : vector<8xf32>
    %114 = vector.multi_reduction <maximumf>, %113, %cst_58 [1] : vector<8x8xf32> to vector<8xf32>
    %115 = vector.shape_cast %114 : vector<8xf32> to vector<8x1xf32>
    %116 = vector.broadcast %115 : vector<8x1xf32> to vector<8x8xf32>
    %117 = arith.subf %113, %116 : vector<8x8xf32>
    %118 = math.exp %117 : vector<8x8xf32>
    %cst_59 = arith.constant dense<0.000000e+00> : vector<8xf32>
    %119 = vector.multi_reduction <add>, %118, %cst_59 [1] : vector<8x8xf32> to vector<8xf32>
    %120 = vector.shape_cast %119 : vector<8xf32> to vector<8x1xf32>
    %121 = tpu.reciprocal %120 : vector<8x1xf32> -> vector<8x1xf32>
    %122 = vector.broadcast %121 : vector<8x1xf32> to vector<8x8xf32>
    %123 = arith.mulf %118, %122 : vector<8x8xf32>
    %cst_60 = arith.constant dense<0.000000e+00> : vector<8x8xf32>
    %124 = tpu.matmul %123, %104, %cst_60 {dimension_numbers = #tpu.dot_dimension_numbers<[1], [0], [0], [1], [0, 0, 1, 1], [], []>} : vector<8x8xf32>, vector<8x8xf32>, vector<8x8xf32> -> vector<8x8xf32>
    %c24 = arith.constant 24 : index
    %c0_61 = arith.constant 0 : index
    %125 = vector.load %arg9[%c24, %c0_61] : memref<32x32xf32, #tpu.memory_space<vmem>>, vector<8x32xf32>
    %cst_62 = arith.constant dense<0.000000e+00> : vector<8x32xf32>
    %126 = tpu.matmul %124, %125, %cst_62 {dimension_numbers = #tpu.dot_dimension_numbers<[1], [0], [0], [1], [0, 0, 1, 1], [], []>} : vector<8x8xf32>, vector<8x32xf32>, vector<8x32xf32> -> vector<8x32xf32>
    %127 = arith.addf %101, %126 : vector<8x32xf32>
    %c0_63 = arith.constant 0 : index
    %c0_64 = arith.constant 0 : index
    %128 = vector.load %arg13[%c0_63, %c0_64] : memref<1x32xf32, #tpu.memory_space<vmem>>, vector<1x32xf32>
    %129 = vector.broadcast %128 : vector<1x32xf32> to vector<8x32xf32>
    %130 = arith.addf %127, %129 : vector<8x32xf32>
    %c0_65 = arith.constant 0 : index
    %c0_66 = arith.constant 0 : index
    %c0_67 = arith.constant 0 : index
    %131 = vector.load %arg14[%c0_65, %c0_66, %c0_67] : memref<1x8x32xf32, #tpu.memory_space<vmem>>, vector<1x8x32xf32>
    %132 = vector.shape_cast %131 : vector<1x8x32xf32> to vector<8x32xf32>
    %133 = vector.shape_cast %130 : vector<8x32xf32> to vector<1x8x32xf32>
    tpu.vector_store %arg14[%c0_65, %c0_66, %c0_67], %133 {strides = array<i32>} : memref<1x8x32xf32, #tpu.memory_space<vmem>>, vector<1x8x32xf32>,
    return
  }
  func.func @transform_0(%arg0: i32, %arg1: i32) -> (i32, i32, i32) {
    %c0_i32 = arith.constant 0 : i32
    %c0_i32_0 = arith.constant 0 : i32
    return %arg0, %arg1, %c0_i32 : i32, i32, i32
  }
  func.func @transform_1(%arg0: i32, %arg1: i32) -> (i32, i32, i32) {
    %c0_i32 = arith.constant 0 : i32
    %c0_i32_0 = arith.constant 0 : i32
    %c0_i32_1 = arith.constant 0 : i32
    return %arg0, %c0_i32, %c0_i32_0 : i32, i32, i32
  }
  func.func @transform_2(%arg0: i32, %arg1: i32) -> (i32, i32, i32) {
    %c0_i32 = arith.constant 0 : i32
    %c0_i32_0 = arith.constant 0 : i32
    %c0_i32_1 = arith.constant 0 : i32
    return %arg0, %c0_i32, %c0_i32_0 : i32, i32, i32
  }
  func.func @transform_3(%arg0: i32, %arg1: i32) -> (i32, i32, i32) {
    %c0_i32 = arith.constant 0 : i32
    %c0_i32_0 = arith.constant 0 : i32
    %c0_i32_1 = arith.constant 0 : i32
    return %arg0, %c0_i32, %c0_i32_0 : i32, i32, i32
  }
  func.func @transform_4(%arg0: i32, %arg1: i32) -> (i32, i32) {
    %c0_i32 = arith.constant 0 : i32
    %c0_i32_0 = arith.constant 0 : i32
    %c0_i32_1 = arith.constant 0 : i32
    return %c0_i32, %c0_i32_0 : i32, i32
  }
  func.func @transform_5(%arg0: i32, %arg1: i32) -> (i32, i32) {
    %c0_i32 = arith.constant 0 : i32
    %c0_i32_0 = arith.constant 0 : i32
    %c0_i32_1 = arith.constant 0 : i32
    return %c0_i32, %c0_i32_0 : i32, i32
  }
  func.func @transform_6(%arg0: i32, %arg1: i32) -> (i32, i32) {
    %c0_i32 = arith.constant 0 : i32
    %c0_i32_0 = arith.constant 0 : i32
    %c0_i32_1 = arith.constant 0 : i32
    return %c0_i32, %c0_i32_0 : i32, i32
  }
  func.func @transform_7(%arg0: i32, %arg1: i32) -> (i32, i32) {
    %c0_i32 = arith.constant 0 : i32
    %c0_i32_0 = arith.constant 0 : i32
    %c0_i32_1 = arith.constant 0 : i32
    return %c0_i32, %c0_i32_0 : i32, i32
  }
  func.func @transform_8(%arg0: i32, %arg1: i32) -> (i32, i32) {
    %c0_i32 = arith.constant 0 : i32
    %c0_i32_0 = arith.constant 0 : i32
    %c0_i32_1 = arith.constant 0 : i32
    return %c0_i32, %c0_i32_0 : i32, i32
  }
  func.func @transform_9(%arg0: i32, %arg1: i32) -> (i32, i32) {
    %c0_i32 = arith.constant 0 : i32
    %c0_i32_0 = arith.constant 0 : i32
    %c0_i32_1 = arith.constant 0 : i32
    return %c0_i32, %c0_i32_0 : i32, i32
  }
  func.func @transform_10(%arg0: i32, %arg1: i32) -> (i32, i32) {
    %c0_i32 = arith.constant 0 : i32
    %c0_i32_0 = arith.constant 0 : i32
    %c0_i32_1 = arith.constant 0 : i32
    return %c0_i32, %c0_i32_0 : i32, i32
  }
  func.func @transform_11(%arg0: i32, %arg1: i32) -> (i32, i32) {
    %c0_i32 = arith.constant 0 : i32
    %c0_i32_0 = arith.constant 0 : i32
    %c0_i32_1 = arith.constant 0 : i32
    return %c0_i32, %c0_i32_0 : i32, i32
  }
  func.func @transform_12(%arg0: i32, %arg1: i32) -> (i32, i32, i32) {
    %c0_i32 = arith.constant 0 : i32
    %c0_i32_0 = arith.constant 0 : i32
    return %arg0, %arg1, %c0_i32 : i32, i32, i32
  }
}

</mosaic_0001>

<bundles_post_ra>
// kernel: tpu_custom_call.1
= control target key start
LH: loop header
LB: loop body
LE: loop exit
PB: predicated region body
PF: predicated region fallthrough
CT: control target
= control target key end

     0   :  { %s3090_s0 = inlined_call_operand.hbm [shape: f32[2,8,32], index: 0, kind: input, shape index: {}]   ;;  %s3091_s1 = inlined_call_operand.hbm [shape: f32[2,8,32], index: 1, kind: input, shape index: {}]   ;;  %s3092_s2 = inlined_call_operand.hbm [shape: f32[2,8,32], index: 2, kind: input, shape index: {}]   ;;  %s3093_s3 = inlined_call_operand.vmem [shape: f32[2,1,8], index: 3, kind: input, shape index: {}]   ;;  %s3094_s4 = inlined_call_operand.hbm [shape: f32[32,32], index: 4, kind: input, shape index: {}]   ;;  %s3095_s5 = inlined_call_operand.hbm [shape: f32[32,32], index: 5, kind: input, shape index: {}]   ;;  %s3096_s6 = inlined_call_operand.hbm [shape: f32[32,32], index: 6, kind: input, shape index: {}]   ;;  %s3097_s7 = inlined_call_operand.hbm [shape: f32[32,32], index: 7, kind: input, shape index: {}]   ;;  %s3098_s8 = inlined_call_operand.vmem [shape: f32[1,32], index: 8, kind: input, shape index: {}]   ;;  %s3099_s9 = inlined_call_operand.vmem [shape: f32[1,32], index: 9, kind: input, shape index: {}]   ;;  %s3100_s10 = inlined_call_operand.vmem [shape: f32[1,32], index: 10, kind: input, shape index: {}]   ;;  %s3101_s11 = inlined_call_operand.vmem [shape: f32[1,32], index: 11, kind: input, shape index: {}]   ;;  %s3102_s12 = inlined_call_operand.hbm [shape: f32[2,8,32], index: 12, kind: output, shape index: {}]  }
   0x1   :  { %3121 = sst [smem:[#allocation27_spill]] %s3091_s1 }
   0x2   :  { %3122 = sst [smem:[#allocation28_spill]] %s3093_s3 }
   0x3   :  { %3123 = sst [smem:[#allocation29_spill]] %s3094_s4 }
   0x4   :  { %3124 = sst [smem:[#allocation30_spill]] %s3095_s5 }
   0x5   :  { %3125 = sst [smem:[#allocation31_spill]] %s3096_s6 }
   0x6   :  { %3126 = sst [smem:[#allocation32_spill]] %s3101_s11 }
   0x7   :  { %3127 = sst [smem:[#allocation33_spill]] %s3102_s12 }
   0x8   :  { %17 = vsyncpa [#allocation3], 0 }
   0x9   :  { %19 = vsyncpa [#allocation3 + $0x1], 0 }
   0xa   :  { %20 = vsyncpa [#allocation6], 0 }
   0xb   :  { %22 = vsyncpa [#allocation6 + $0x1], 0 }
   0xc   :  { %23 = vsyncpa [#allocation9], 0 }
   0xd   :  { %24 = vsyncpa [#allocation12], 0 }
   0xe   :  { %25 = vsyncpa [#allocation4], 0 }
   0xf   :  { %27 = vsyncpa [#allocation4 + $0x1], 0  ;;  %s2692_s21 = smov 0   ;;  %s2694_s22 = smov 0  }
  0x10   :  { %s2696_s23 = smov 0   ;;  %s2698_s24 = smov 0  }
  0x11   :  { %s2700_s25 = smov 0   ;;  %s2702_s26 = smov 0  }
  0x12 LB: > { %3128 = sst [smem:[#allocation20_spill]] %s2589_s21  ;;  %s2723_s27 = sadd.s32 4294967295, %s2609_s26   ;;  %s2609_s26 = sphi %s2702_s26, %s33_s26   ;;  %s2605_s25 = sphi %s2700_s25, %s3169_s25   ;;  %s2601_s24 = sphi %s2698_s24, %s3168_s24   ;;  %s2597_s23 = sphi %s2696_s23, %s3172_s23   ;;  %s2593_s22 = sphi %s2694_s22, %s3171_s22   ;;  %s2589_s21 = sphi %s2692_s21, %s3170_s21  }
  0x13   : > { %3129 = sst [smem:[#allocation21_spill]] %s2605_s25  ;;  %p2012_p0 = scmp.ge.s32.totalorder %s2609_s26, 1 }
  0x14   : > { %3130 = sst [smem:[#allocation22_spill]] %s2609_s26  ;;  %p3115_p1 = scmp.eq.s32.totalorder %s2723_s27, 0 }
  0x15   : > { %p352_p2 = scmp.lt.s32.totalorder %s2609_s26, 3  ;;  %s2611_s29 = smov [#allocation8]  }
  0x16   : > { %s364_s30 = sshll.u32 %s2611_s29, 4  ;;  %s2612_s14 = smov [#allocation11]   ;;  %s365_s30 = int_to_ptr.vmem [resolvable:$true] %s364_s30 }
  0x17   : > { %p2728_p3 = pnand %p2012_p0, %p352_p2  ;;  %s390_s15 = sshll.u32 %s2612_s14, 4  ;;  %s391_s15 = int_to_ptr.vmem [resolvable:$true] %s390_s15 }
  0x18   : > { %s2340_s16 = scalar_lea.vmem %s365_s30, 512  ;;  %p2348_p11 = scmp.lt.s32.totalorder %s365_s30, %s365_s30 }
  0x19   : > { %p2216_p4 = pneg %p2728_p3  ;;  %p2341_p8 = scmp.ne.s32.totalorder %s365_s30, %s2340_s16 }
  0x1a   : > { %p2349_p12 = scmp.lt.s32.totalorder %s2340_s16, %s2340_s16 }
  0x1b   : > { %p2737_p6 = pnand %p2216_p4, %p3115_p1 }
  0x1c   : > { %p2350_p13 = por %p2349_p12, %p2348_p11 }
  0x1d   : > { %p3116_p7 = pneg %p2737_p6 }
  0x1f   : > { %p2343_p9 = pnand %p2341_p8, %p3116_p7 }
  0x21   : > { %p2344_p10 = pneg %p2343_p9 }
  0x23   : > { %p2351_p0 = pnand %p2350_p13, %p2344_p10 }
  0x25   : > { %2354 = shalt.err (!%p2351_p0)
}
  0x26   : > { %s3103_s17 = smov 128   ;;  %s3105_s18 = smov 8  }
  0x27   : > { %s3133_s4 = sld [smem:[#allocation29_spill]]  ;;  %s2366_s29 = scalar_lea.vmem %s391_s15, 512 }
  0x28   : > { %p2367_p2 = scmp.ne.s32.totalorder %s391_s15, %s2366_s29  ;;  %p2374_p9 = scmp.lt.s32.totalorder %s391_s15, %s391_s15 }
  0x29   : > { %p2375_p10 = scmp.lt.s32.totalorder %s2366_s29, %s2366_s29 }
  0x2a   : > { %p2369_p4 = pnand %p2367_p2, %p3116_p7 }
  0x2b   : > { %p2376_p11 = por %p2375_p10, %p2374_p9 }
  0x2c   : > { %p2370_p8 = pneg %p2369_p4 }
  0x2d   : > { %2219 = dma.hbm_to_vmem [thread:$0]  (!%p2737_p6), %s3133_s4, 512, %s365_s30, [#allocation9], %s3103_s17, %s3103_s17, %s3105_s18  }
  0x2e   : > { %p2377_p12 = pnand %p2376_p11, %p2370_p8 }
  0x30   : > { %2380 = shalt.err (!%p2377_p12)
}
  0x31   : > { %s3134_s6 = sld [smem:[#allocation31_spill]]  ;;  %s2011_s30 = sadd.s32 4294967294, %s2609_s26  }
  0x32   : > { %s45_s19 = sadd.s32 1, %s2605_s25  ;;  %s54_s20 = sadd.s32 1, %s2597_s23 }
  0x33   : > { %p47_p13 = scmp.ge.s32.totalorder %s45_s19, 2  ;;  %p61_p0 = scmp.ne.s32.totalorder %s2597_s23, %s2593_s22 }
  0x34   : > { %p62_p2 = scmp.eq.s32.totalorder %s2609_s26, 0  ;;  %p67_p8 = scmp.ne.s32.totalorder %s2593_s22, %s2589_s21 }
  0x35   : > { %s3174_s19 = smov (%p47_p13, %s45_s19), 0  ;;  %p339_p9 = scmp.eq.s32.totalorder %s2723_s27, 1 }
  0x36   : > { %3135 = sst [smem:[#allocation23_spill]] %s3174_s19  ;;  %p2773_p4 = por %p62_p2, %p61_p0 }
  0x37   : > { %2225 = dma.hbm_to_vmem [thread:$0]  (!%p2737_p6), %s3134_s6, 512, %s391_s15, [#allocation12], %s3103_s17, %s3103_s17, %s3105_s18  }
  0x38   : > { %s49_s15 = ssub.s32 %s2605_s25, %s3174_s19  ;;  %p2784_p11 = por %p3115_p1, %p67_p8 }
  0x39   : > { %p52_p10 = scmp.eq.s32.totalorder %s49_s15, 0  ;;  %p2788_p12 = por %p339_p9, %p61_p0 }
  0x3a   : > { %p345_p13 = scmp.eq.s32.totalorder %s2011_s30, 1  ;;  %p2247_p5 = scmp.lt.s32.totalorder %s2609_s26, 2 }
  0x3b   : > { %s3138_s16 = scalar_select %p2788_p12, 1, 0 }
  0x3c   : > { %s2793_s17 = scalar_select %p52_p10, %s2597_s23, %s54_s20  }
  0x3d   : > { %3139 = sst [smem:[#allocation24_spill]] %s3138_s16  ;;  %p2795_p2 = por %p345_p13, %p67_p8 }
  0x3e   : > { %3140 = sst [smem:[#allocation25_spill]] %s2793_s17  ;;  %s3112_s4 = sand.u32 1, %s2597_s23  }
  0x3f   : > { %s3141_s18 = scalar_select %p2795_p2, 1, 0 }
  0x40   : > { %s2802_s6 = sshll.u32 %s2605_s25, 7  ;;  %s2806_s15 = sshll.u32 %s3112_s4, 3 }
  0x41   : > { %3142 = sst [smem:[#allocation26_spill]] %s3141_s18  ;;  %p2810_p0 = pnand %p2247_p5, %p2773_p4 }
  0x42   : > { %s448_s30 = sand.u32 1, %s2609_s26   ;;  %s3144_s1 = sld [smem:[#allocation27_spill]] }
  0x43   : > { %s452_s21 = scalar_lea.vmem [#allocation5], %s2806_s15  ;;  %s2820_s12 = scalar_lea.sflag [#allocation6], %s448_s30 }
  0x44   : > { %s459_s25 = sshll.u32 %s452_s21, 4  ;;  %p3117_p8 = pneg %p2810_p0  ;;  %s460_s25 = int_to_ptr.vmem [resolvable:$true] %s459_s25 }
  0x45   : > { %s2394_s29 = scalar_lea.vmem %s460_s25, 128  ;;  %s2615_s4 = smov [#allocation5]  }
  0x46   : > { %p2395_p9 = scmp.ne.s32.totalorder %s460_s25, %s2394_s29  ;;  %s2399_s11 = sshll.u32 %s2615_s4, 4  ;;  %s2400_s11 = int_to_ptr.vmem [resolvable:$false] %s2399_s11 }
  0x47   : > { %s2401_s26 = scalar_lea.vmem %s2400_s11, 256  ;;  %p2402_p10 = scmp.lt.s32.totalorder %s460_s25, %s2400_s11 }
  0x48   : > { %s457_s18 = scalar_lea.hbm %s3144_s1, %s2802_s6  ;;  %p2397_p5 = pnand %p2395_p9, %p3117_p8 }
  0x49   : > { %p2403_p13 = scmp.lt.s32.totalorder %s2401_s26, %s2394_s29 }
  0x4a   : > { %p2398_p4 = pneg %p2397_p5 }
  0x4b   : > { %p2404_p1 = por %p2403_p13, %p2402_p10 }
  0x4d   : > { %p2405_p7 = pnand %p2404_p1, %p2398_p4 }
  0x4f   : > { %2408 = shalt.err (!%p2405_p7)
}
  0x50   : > { %2235 = dma.hbm_to_vmem [thread:$0]  (!%p2810_p0), %s457_s18, 128, %s460_s25, %s2820_s12  }
  0x51   : > { %s2616_s21 = smov [#allocation10]   ;;  %s2617_s30 = smov [#allocation13]  }
  0x52   : > { %s377_s17 = sshll.u32 %s2616_s21, 4  ;;  %s403_s20 = sshll.u32 %s2617_s30, 4  ;;  %s378_s17 = int_to_ptr.vmem [resolvable:$true] %s377_s17  ;;  %s404_s20 = int_to_ptr.vmem [resolvable:$true] %s403_s20 }
  0x53   : > { %s2420_s1 = scalar_lea.vmem %s378_s17, 512  ;;  %p3145_p5 = pneg %p2737_p6 }
  0x54   : > { %p2421_p9 = scmp.ne.s32.totalorder %s378_s17, %s2420_s1  ;;  %p2428_p12 = scmp.lt.s32.totalorder %s378_s17, %s378_s17 }
  0x55   : > { %p2429_p10 = scmp.lt.s32.totalorder %s2420_s1, %s2420_s1 }
  0x56   : > { %p2423_p8 = pnand %p2421_p9, %p3145_p5 }
  0x57   : > { %p2430_p1 = por %p2429_p10, %p2428_p12 }
  0x58   : > { %p2424_p2 = pneg %p2423_p8 }
  0x5a   : > { %p2431_p7 = pnand %p2430_p1, %p2424_p2 }
  0x5c   : > { %2434 = shalt.err (!%p2431_p7)
}
  0x5d   : > { %s3146_s4 = smov 8   ;;  %s3147_s11 = smov 128  }
  0x5e   : > { %s3148_s5 = sld [smem:[#allocation30_spill]]  ;;  %s2446_s18 = scalar_lea.vmem %s404_s20, 512 }
  0x5f   : > { %p2447_p4 = scmp.ne.s32.totalorder %s404_s20, %s2446_s18  ;;  %p3149_p8 = pmov %p3145_p5 }
  0x60   : > { %p2454_p12 = scmp.lt.s32.totalorder %s404_s20, %s404_s20  ;;  %p2455_p2 = scmp.lt.s32.totalorder %s2446_s18, %s2446_s18 }
  0x61   : > { %p2449_p13 = pnand %p2447_p4, %p3149_p8 }
  0x62   : > { %p2456_p5 = por %p2455_p2, %p2454_p12 }
  0x63   : > { %p2450_p9 = pneg %p2449_p13 }
  0x64   : > { %2222 = dma.hbm_to_vmem [thread:$0]  (!%p2737_p6), %s3148_s5, 512, %s378_s17, [#allocation9], %s3147_s11, %s3147_s11, %s3146_s4  }
  0x65   : > { %p2457_p10 = pnand %p2456_p5, %p2450_p9 }
  0x67   : > { %2460 = shalt.err (!%p2457_p10)
}
  0x68   : > { %2228 = dma.hbm_to_vmem [thread:$0]  (!%p2737_p6), %s3097_s7, 512, %s404_s20, [#allocation12], %s3147_s11, %s3147_s11, %s3146_s4  }
  0x69   : > { %s439_s30 = scalar_lea.hbm %s3090_s0, %s2802_s6  ;;  %s433_s25 = scalar_lea.vmem [#allocation2], %s2806_s15 }
  0x6a   : > { %s441_s26 = sshll.u32 %s433_s25, 4  ;;  %s475_s5 = scalar_lea.hbm %s3092_s2, %s2802_s6  ;;  %s442_s26 = int_to_ptr.vmem [resolvable:$true] %s441_s26 }
  0x6b   : > { %s3150_s16 = sand.u32 1, %s2597_s23   ;;  %s2474_s1 = scalar_lea.vmem %s442_s26, 128 }
  0x6c   : > { %s430_s3 = scalar_lea.sflag [#allocation3], %s3150_s16  ;;  %p2475_p1 = scmp.ne.s32.totalorder %s442_s26, %s2474_s1 }
  0x6d   : > { %p3151_p7 = pneg %p2810_p0  ;;  %s2618_s20 = smov [#allocation2]  }
  0x6e   : > { %s2479_s4 = sshll.u32 %s2618_s20, 4  ;;  %s2480_s4 = int_to_ptr.vmem [resolvable:$false] %s2479_s4 }
  0x6f   : > { %p2477_p4 = pnand %p2475_p1, %p3151_p7  ;;  %s2481_s11 = scalar_lea.vmem %s2480_s4, 256 }
  0x70   : > { %p2482_p6 = scmp.lt.s32.totalorder %s442_s26, %s2480_s4  ;;  %p2483_p13 = scmp.lt.s32.totalorder %s2481_s11, %s2474_s1 }
  0x71   : > { %p2478_p8 = pneg %p2477_p4 }
  0x72   : > { %p2484_p9 = por %p2483_p13, %p2482_p6 }
  0x74   : > { %p2485_p12 = pnand %p2484_p9, %p2478_p8 }
  0x76   : > { %2488 = shalt.err (!%p2485_p12)
}
  0x77   : > { %2232 = dma.hbm_to_vmem [thread:$0]  (!%p2810_p0), %s439_s30, 128, %s442_s26, %s430_s3  }
  0x78   : > { %s470_s16 = scalar_lea.vmem [#allocation7], %s2806_s15  ;;  %p3152_p5 = pmov %p3151_p7 }
  0x79   : > { %s477_s29 = sshll.u32 %s470_s16, 4  ;;  %s2619_s17 = smov [#allocation7]   ;;  %s478_s29 = int_to_ptr.vmem [resolvable:$true] %s477_s29 }
  0x7a   : > { %s2502_s21 = scalar_lea.vmem %s478_s29, 128  ;;  %s2507_s25 = sshll.u32 %s2619_s17, 4  ;;  %s2508_s25 = int_to_ptr.vmem [resolvable:$false] %s2507_s25 }
  0x7b   : > { %p2503_p2 = scmp.ne.s32.totalorder %s478_s29, %s2502_s21  ;;  %s2509_s13 = scalar_lea.vmem %s2508_s25, 256 }
  0x7c   : > { %p2510_p7 = scmp.lt.s32.totalorder %s478_s29, %s2508_s25  ;;  %p2511_p4 = scmp.lt.s32.totalorder %s2509_s13, %s2502_s21 }
  0x7d   : > { %p2505_p10 = pnand %p2503_p2, %p3152_p5 }
  0x7e   : > { %p2512_p8 = por %p2511_p4, %p2510_p7 }
  0x7f   : > { %p2506_p1 = pneg %p2505_p10 }
  0x81   : > { %p2513_p6 = pnand %p2512_p8, %p2506_p1 }
  0x83   : > { %2516 = shalt.err (!%p2513_p6)
}
  0x84   : > { %2238 = dma.hbm_to_vmem [thread:$0]  (!%p2810_p0), %s475_s5, 128, %s478_s29, %s2820_s12  }
  0x85   : > { %492 = sbr.rel (%p2728_p3) target bundleno = 2601 (0xa29), region = 68  ;;  %s2883_s30 = sand.u32 (!%p2728_p3), 1, %s2593_s22  }
  0x86   : > { %s2886_s26 = sshll.u32 (!%p2728_p3), %s2883_s30, 3  ;;  %s495_s19 = scalar_lea.sflag (!%p2728_p3), [#allocation3], %s2883_s30 }
  0x87   : > { %s498_s18 = scalar_lea.vmem (!%p2728_p3), [#allocation2], %s2886_s26 }
  0x8a   : > { %2568 = dma.done.wait (%p2784_p11), %s495_s19, 128  }
  0x8b   : > { %2570 = vsyncadd (%p2784_p11), %s495_s19, 4294967168  ;;  %s503_s5 = sand.u32 1, %s2723_s27   ;;  %s507_s12 = scalar_lea.vmem [#allocation5], %s2886_s26 }
  0x8c   : > { %s504_s6 = scalar_lea.sflag [#allocation6], %s503_s5 }
  0x8d   : > { %2572 = dma.done.wait (%p2784_p11), %s504_s6, 256  }
  0x8e   : > { %2574 = vsyncadd (%p2784_p11), %s504_s6, 4294967040  ;;  %s516_s28 = scalar_lea.vmem [#allocation7], %s2886_s26  ;;  %p3153_p3 = scmp.eq.s32.totalorder %s2723_s27, 0 }
  0x90   : > { %2576 = dma.done.wait (%p3153_p3), [#allocation9], 1024   ;;  %p3154_p0 = pmov %p3153_p3 }
  0x92   : > { %2578 = vsyncadd (%p3154_p0), [#allocation9], 4294966272  ;;  %p3155_p13 = pmov %p3154_p0 }
  0x93   : > { %p3156_p9 = pmov %p3154_p0 }
  0x94   : > { %2580 = dma.done.wait (%p3155_p13), [#allocation12], 1024  }
  0x95   : > { %2582 = vsyncadd (%p3156_p9), [#allocation12], 4294966272  ;;  %v2620_v0 = vmov 0.0   ;;  %vm2621_vm0 = vmmov 0   ;;  %v681_v1 = vld [vmem:[#allocation10 + $0x18] sm:$0xff]  ;;  %v680_v3 = vld [vmem:[#allocation10 + $0x10] sm:$0xff]  ;;  %v926_v30 = vlaneseq }
  0x96   : > { %2110 = vmatprep.subr.mxu1 %v2620_v0  ;;  %2099 = vmatprep.subr.mxu0 %v2620_v0  ;;  %v596_v2 = vld [vmem:[#allocation8 + $0x18] sm:$0xff]  ;;  %v595_v4 = vld [vmem:[#allocation8 + $0x10] sm:$0xff]  ;;  %v679_v5 = vld [vmem:[#allocation10 + $0x8] sm:$0xff]  ;;  %vm604_vm1 = vcmask 261120   ;;  %vm846_vm2 = vcmask 64512   ;;  %s2622_s4 = smov 120  }
  0x97   : > { %2118 = vmatprep.mubr.msk.f32.mxu1 %vm2621_vm0, %v2620_v0  ;;  %2107 = vmatprep.mubr.msk.f32.mxu0 %vm2621_vm0, %v2620_v0  ;;  %v594_v6 = vld [vmem:[#allocation8 + $0x8] sm:$0xff]  ;;  %v678_v7 = vld [vmem:[#allocation10] sm:$0xff]  ;;  %v589_v10 = vld [vmem:[%s498_s18] sm:$0xff]  ;;  %p586_p11 = scmp.lt.s32.totalorder %s2601_s24, 1  ;;  %s3157_s25 = sld [smem:[#allocation28_spill]]  ;;  %v927_v32 = vshrl.u32 %v926_v30, 7 }
  0x98   : > { %2111 = vmatpush3.msra.mxu1 %v681_v1  ;;  %2100 = vmatpush3.msra.mxu0 %v596_v2  ;;  %v593_v8 = vld [vmem:[#allocation8] sm:$0xff]  ;;  %v765_v11 = vld [vmem:[#allocation11 + $0x18] sm:$0xff]  ;;  %v764_v12 = vld [vmem:[#allocation11 + $0x10] sm:$0xff]  ;;  %v2623_v34 = vmov 0   ;;  %s2624_s3 = smov 112   ;;  %s2625_s15 = smov 104  }
  0x99   : > { %2112 = vmatprep.subr.mxu1 %v2620_v0  ;;  %2101 = vmatprep.subr.mxu0 %v2620_v0  ;;  %v590_v9 = vld [vmem:[%s507_s12] sm:$0xff]  ;;  %v591_v15 = vld [vmem:[%s516_s28] sm:$0xff]  ;;  %s587_s29 = scalar_select %p586_p11, %s2601_s24, 1  ;;  %v928_v33 = vsub.s32 0, %v927_v32 }
  0x9a   : > { %2113 = vmatpush3.msra.mxu1 %v680_v3  ;;  %2102 = vmatpush3.msra.mxu0 %v595_v4  ;;  %v763_v13 = vld [vmem:[#allocation11 + $0x8] sm:$0xff]  ;;  %v762_v14 = vld [vmem:[#allocation11] sm:$0xff]  ;;  %v2035_v16 = vld [vmem:[%s3099_s9] ss:$0 sm:$0xff]  ;;  %s3158_s19 = sld [smem:[#allocation24_spill]]  ;;  %s2057_s12 = sshll.u32 %s2601_s24, 7 }
  0x9b   : > { %2114 = vmatprep.subr.mxu1 %v2620_v0  ;;  %2103 = vmatprep.subr.mxu0 %v2620_v0  ;;  %v2033_v17 = vld [vmem:[%s3098_s8] ss:$0 sm:$0xff]  ;;  %v1185_v60 = vld [vmem:[#allocation13 + $0x8] sm:$0xff]  ;;  %v1016_v2 = vld [vmem:[#allocation13] sm:$0xff]  ;;  %s3159_s6 = sld [smem:[#allocation32_spill]]  ;;  %s585_s28 = scalar_lea.vmem [#allocation14], %s2886_s26 }
  0x9c   : > { %2115 = vmatpush3.msra.mxu1 %v679_v5  ;;  %2104 = vmatpush3.msra.mxu0 %v594_v6  ;;  %v2037_v24 = vld [vmem:[%s3100_s10] ss:$0 sm:$0xff]  ;;  %s1840_s27 = sshll.u32 %s585_s28, 4  ;;  %s3160_s20 = sld [smem:[#allocation33_spill]]  ;;  %s1841_s27 = int_to_ptr.vmem [resolvable:$true] %s1840_s27 }
  0x9d   : > { %2116 = vmatprep.subr.mxu1 %v2620_v0  ;;  %2105 = vmatprep.subr.mxu0 %v2620_v0  ;;  %s588_s13 = scalar_lea.vmem %s3157_s25, %s587_s29  ;;  %s1826_s11 = scalar_lea.sflag [#allocation4], %s2883_s30 }
  0x9e   : > { %2117 = vmatpush3.msra.mxu1 %v678_v7  ;;  %2106 = vmatpush3.msra.mxu0 %v593_v8  ;;  %v592_v31 = vld [vmem:[%s588_s13] sm:$0x1]  ;;  %s2517_s16 = scalar_lea.vmem %s1841_s27, 128  ;;  %s2626_s29 = smov [#allocation14]  }
  0x9f   : > { %2119 = vmatmul.mubr.msk.f32.vlgmr.msra.gmra.mxu1 %vm604_vm1, %v590_v9  ;;  %2108 = vmatmul.mubr.msk.f32.vlgmr.msra.gmra.mxu0 %vm604_vm1, %v589_v10  ;;  %vm924_vm3 = vcmp.eq.f32.partialorder %v592_v31, 0.0  ;;  %p2518_p12 = scmp.ne.s32.totalorder %s1841_s27, %s2517_s16  ;;  %s2521_s24 = sshll.u32 %s2626_s29, 4  ;;  %s2522_s24 = int_to_ptr.vmem [resolvable:$false] %s2521_s24 }
  0xa0   : > { %2132 = vmatprep.subr.mxu1 %v2620_v0  ;;  %2134 = vmatprep.mubr.msk.f32.mxu1 %vm2621_vm0, %v2620_v0  ;;  %v925_v35 = vsel %vm924_vm3, 1, %v2623_v34  ;;  %p3161_p2 = scmp.ne.s32.totalorder %s3158_s19, 0  ;;  %s2523_s26 = scalar_lea.vmem %s2522_s24, 256 }
  0xa1   : > { %2121 = vmatprep.subr.mxu0 %v2620_v0  ;;  %2129 = vmatprep.mubr.msk.f32.mxu0 %vm2621_vm0, %v2620_v0  ;;  %v2980_v36 = vrot.slane %v925_v35, %v928_v33  ;;  %p2524_p1 = scmp.lt.s32.totalorder %s1841_s27, %s2522_s24  ;;  %p2525_p7 = scmp.lt.s32.totalorder %s2523_s26, %s2517_s16 }
  0xa2   : > { %2122 = vmatpush3.msra.mxu0 %v765_v11  ;;  %p2519_p5 = pnand %p2518_p12, %p3161_p2 }
  0xa3   : > { %2123 = vmatprep.subr.mxu0 %v2620_v0  ;;  %vm930_vm4 = vcmp.eq.s32.totalorder %v2980_v36, 1  ;;  %p2526_p4 = por %p2525_p7, %p2524_p1 }
  0xa4   : > { %2124 = vmatpush3.msra.mxu0 %v764_v12  ;;  %p2520_p10 = pneg %p2519_p5 }
  0xa5   : > { %2125 = vmatprep.subr.mxu0 %v2620_v0 }
  0xa6   : > { %2126 = vmatpush3.msra.mxu0 %v763_v13  ;;  %p2527_p8 = pnand %p2526_p4, %p2520_p10 }
  0xa7   : > { %2127 = vmatprep.subr.mxu0 %v2620_v0 }
  0xa8   : > { %2128 = vmatpush3.msra.mxu0 %v762_v14 }
  0xa9   : > { %2130 = vmatmul.mubr.msk.f32.vlgmr.msra.gmra.mxu0 %vm604_vm1, %v591_v15  ;;  %2142 = vmatprep.subr.mxu0 %v2620_v0 }
  0xaa   : > { %2144 = vmatprep.mubr.msk.f32.mxu0 %vm2621_vm0, %v2620_v0 }
 0x15f   : > { %v758_v18 = vpop.f32.mrf.mxu1  ;;  %v674_v19 = vpop.f32.mrf.mxu0 }
 0x160   : > { %v2948_v20 = vadd.f32 %v2035_v16, %v758_v18  ;;  %v2950_v21 = vadd.f32 %v2033_v17, %v674_v19 }
 0x161   : > { %v2120_v22 = vpop.f32.mrf.mxu1  ;;  %v2109_v23 = vpop.f32.mrf.mxu0 }
 0x162   : > { %1019 = vrot.lane.b32.xlu0 %v2948_v20, %s2622_s4  ;;  %2133 = vmatpush3.xpose.msk.msra.mxu1 %vm846_vm2, %v2948_v20 }
 0x163   : > { %2137 = vmatprep.subr.mxu1 %v2620_v0 }
 0x165   : > { %2135 = vmatmul.mubr.msk.f32.vlgmr.msra.gmra.mxu1 %vm846_vm2, %v2950_v21 }
 0x166   : > { %1017 = vrot.lane.b32.xlu0 %v2950_v21, %s2622_s4  ;;  %2139 = vmatprep.mubr.msk.f32.mxu1 %vm2621_vm0, %v2620_v0 }
 0x169   : > { %v842_v25 = vpop.f32.mrf.mxu0 }
 0x16a   : > { %v2966_v26 = vadd.f32 %v2037_v24, %v842_v25 }
 0x16b   : > { %v2131_v27 = vpop.f32.mrf.mxu0 }
 0x16c   : > { %2138 = vmatpush3.msra.mxu1 %v2966_v26 }
 0x16d   : > { %2147 = vmatprep.subr.mxu1 %v2620_v0 }
 0x1d4   : > { %v1020_v28 = vpop.permute.xlu0 %1019 }
 0x1d5   : > { %2143 = vmatpush3.xpose.msk.msra.mxu0 %vm846_vm2, %v1020_v28 }
 0x1d6   : > { %2152 = vmatprep.subr.mxu0 %v2620_v0 }
 0x1d8   : > { %v1018_v29 = vpop.permute.xlu0 %1017 }
 0x1d9   : > { %2145 = vmatmul.mubr.msk.f32.vlgmr.msra.gmra.mxu0 %vm846_vm2, %v1018_v29 }
 0x1da   : > { %2154 = vmatprep.mubr.msk.f32.mxu0 %vm2621_vm0, %v2620_v0  ;;  %2153 = vmatpush3.msra.mxu0 %v1185_v60 }
 0x1db   : > { %2162 = vmatprep.subr.mxu0 %v2620_v0 }
 0x225   : > { %v919_v37 = vpop.f32.mrf.mxu1 }
 0x226   : > { %v923_v38 = vmul.f32 0.35355338, %v919_v37 }
 0x227   : > { %v2136_v39 = vpop.f32.mrf.mxu1 }
 0x228   : > { %v931_v40 = vsel %vm930_vm4, -1e+09, %v923_v38 }
 0x229   : > { %v932_v41 = vsel %vm846_vm2, %v931_v40, -inf }
 0x22a   : > { %933 = vmax.xlane.f32.xlu1 %v932_v41 }
 0x299   : > { %v1091_v42 = vpop.f32.mrf.mxu0 }
 0x29a   : > { %v1095_v43 = vmul.f32 0.35355338, %v1091_v42 }
 0x29b   : > { %v2146_v44 = vpop.f32.mrf.mxu0 }
 0x29c   : > { %v1096_v45 = vsel %vm930_vm4, -1e+09, %v1095_v43  ;;  %v1741_v44 = vld [vmem:[#allocation13 + $0x18] sm:$0xff] }
 0x29d   : > { %v1097_v46 = vsel %vm846_vm2, %v1096_v45, -inf }
 0x29e   : > { %1098 = vmax.xlane.f32.xlu1 %v1097_v46 }
 0x2b3   : > { %v934_v47 = vpop.xlane.xlu1 %933 }
 0x2b4   : > { %v935_v48 = vsub.f32 %v931_v40, %v934_v47 }
 0x2b6   : > { %v936_v49 = vmul.f32 1.442695, %v935_v48 }
 0x2b8   : > { %2313 = vpow2.f32 %v936_v49 }
 0x2c5   : > { %v2314_v50 = vpop.eup %2313 }
 0x2c6   : > { %v938_v51 = vsel %vm846_vm2, %v2314_v50, 0.0 }
 0x2c7   : > { %939 = vadd.xlane.f32.xlu0 %v938_v51 }
 0x2dd   : > { %1423 = vrot.lane.b32.xlu0 %v2966_v26, %s2624_s3 }
 0x327   : > { %v1099_v52 = vpop.xlane.xlu1 %1098 }
 0x328   : > { %v1100_v53 = vsub.f32 %v1096_v45, %v1099_v52 }
 0x32a   : > { %v1101_v54 = vmul.f32 1.442695, %v1100_v53  ;;  %v2055_v53 = vld [vmem:[%s3159_s6] ss:$0 sm:$0xff] }
 0x32c   : > { %2315 = vpow2.f32 %v1101_v54 }
 0x339   : > { %v2316_v55 = vpop.eup %2315 }
 0x33a   : > { %v1103_v56 = vsel %vm846_vm2, %v2316_v55, 0.0 }
 0x33b   : > { %1104 = vadd.xlane.f32.xlu1 %v1103_v56 }
 0x34c   : > { %1109 = vrot.lane.b32.xlu1 %v2966_v26, %s2622_s4  ;;  %s1838_s4 = scalar_lea.hbm %s3160_s20, %s2057_s12 }
 0x350   : > { %v940_v57 = vpop.xlane.xlu0 %939  ;;  %1334 = vrot.lane.b32.xlu1 %v2948_v20, %s2624_s3 }
 0x351   : > { %2317 = vrcp.f32 %v940_v57 }
 0x354   : > { %1332 = vrot.lane.b32.xlu1 %v2950_v21, %s2624_s3  ;;  %v1424_v4 = vpop.permute.xlu0 %1423 }
 0x35e   : > { %v2318_v58 = vpop.eup %2317 }
 0x35f   : > { %v942_v59 = vmul.f32 %v2318_v58, %v2314_v50 }
 0x361   : > { %2140 = vmatmul.mubr.msk.f32.vlgmr.msra.gmra.mxu1 %vm846_vm2, %v942_v59 }
 0x362   : > { %2149 = vmatprep.mubr.msk.f32.mxu1 %vm2621_vm0, %v2620_v0 }
 0x3c4   : > { %v1105_v61 = vpop.xlane.xlu1 %1104 }
 0x3c5   : > { %2319 = vrcp.f32 %v1105_v61 }
 0x3c8   : > { %v1110_v62 = vpop.permute.xlu1 %1109 }
 0x3c9   : > { %2148 = vmatpush3.msra.mxu1 %v1110_v62 }
 0x3ca   : > { %2157 = vmatprep.subr.mxu1 %v2620_v0 }
 0x3cc   : > { %v1335_v6 = vpop.permute.xlu1 %1334 }
 0x3d0   : > { %v1333_v9 = vpop.permute.xlu1 %1332 }
 0x3d2   : > { %v2320_v63 = vpop.eup %2319 }
 0x3d3   : > { %v1107_v1 = vmul.f32 %v2320_v63, %v2316_v55 }
 0x3d5   : > { %2150 = vmatmul.mubr.msk.f32.vlgmr.msra.gmra.mxu1 %vm846_vm2, %v1107_v1 }
 0x3d6   : > { %2158 = vmatpush3.msra.mxu1 %v1016_v2  ;;  %2159 = vmatprep.mubr.msk.f32.mxu1 %vm2621_vm0, %v2620_v0 }
 0x3d7   : > { %2167 = vmatprep.subr.mxu1 %v2620_v0 }
 0x421   : > { %v1012_v3 = vpop.f32.mrf.mxu1 }
 0x422   : > { %2160 = vmatmul.mubr.msk.f32.vlgmr.msra.gmra.mxu1 %vm846_vm2, %v1012_v3 }
 0x423   : > { %2168 = vmatpush3.msra.mxu1 %v1424_v4  ;;  %v2141_v5 = vpop.f32.mrf.mxu1  ;;  %2169 = vmatprep.mubr.msk.f32.mxu1 %vm2621_vm0, %v2620_v0 }
 0x424   : > { %2177 = vmatprep.subr.mxu1 %v2620_v0 }
 0x495   : > { %v1181_v7 = vpop.f32.mrf.mxu1 }
 0x496   : > { %2155 = vmatmul.mubr.msk.f32.vlgmr.msra.gmra.mxu0 %vm846_vm2, %v1181_v7 }
 0x497   : > { %2163 = vmatpush3.xpose.msk.msra.mxu0 %vm846_vm2, %v1335_v6  ;;  %v2151_v8 = vpop.f32.mrf.mxu1  ;;  %2164 = vmatprep.mubr.msk.f32.mxu0 %vm2621_vm0, %v2620_v0 }
 0x498   : > { %2172 = vmatprep.subr.mxu0 %v2620_v0 }
 0x49a   : > { %2165 = vmatmul.mubr.msk.f32.vlgmr.msra.gmra.mxu0 %vm846_vm2, %v1333_v9 }
 0x49b   : > { %2174 = vmatprep.mubr.msk.f32.mxu0 %vm2621_vm0, %v2620_v0 }
 0x4e2   : > { %v1328_v10 = vpop.f32.mrf.mxu1 }
 0x4e4   : > { %v2161_v11 = vpop.f32.mrf.mxu1 }
 0x556   : > { %v1255_v12 = vpop.f32.mrf.mxu0 }
 0x558   : > { %v2156_v13 = vpop.f32.mrf.mxu0 }
 0x55a   : > { %v1406_v14 = vpop.f32.mrf.mxu0 }
 0x55b   : > { %v1410_v15 = vmul.f32 0.35355338, %v1406_v14 }
 0x55c   : > { %v2166_v16 = vpop.f32.mrf.mxu0 }
 0x55d   : > { %v1411_v17 = vsel %vm930_vm4, -1e+09, %v1410_v15 }
 0x55e   : > { %v1412_v18 = vsel %vm846_vm2, %v1411_v17, -inf }
 0x55f   : > { %1413 = vmax.xlane.f32.xlu1 %v1412_v18 }
 0x5e8   : > { %v1414_v19 = vpop.xlane.xlu1 %1413 }
 0x5e9   : > { %v1415_v22 = vsub.f32 %v1411_v17, %v1414_v19 }
 0x5eb   : > { %v1416_v23 = vmul.f32 1.442695, %v1415_v22 }
 0x5ed   : > { %2321 = vpow2.f32 %v1416_v23 }
 0x5fa   : > { %v2322_v24 = vpop.eup %2321 }
 0x5fb   : > { %v1418_v25 = vsel %vm846_vm2, %v2322_v24, 0.0 }
 0x5fc   : > { %1419 = vadd.xlane.f32.xlu0 %v1418_v25 }
 0x612   : > { %1576 = vrot.lane.b32.xlu0 %v2948_v20, %s2625_s15  ;;  %v1499_v20 = vld [vmem:[#allocation13 + $0x10] sm:$0xff] }
 0x613   : > { %2173 = vmatpush3.msra.mxu0 %v1499_v20 }
 0x614   : > { %2182 = vmatprep.subr.mxu0 %v2620_v0 }
 0x616   : > { %1574 = vrot.lane.b32.xlu0 %v2950_v21, %s2625_s15 }
 0x685   : > { %v1420_v27 = vpop.xlane.xlu0 %1419 }
 0x686   : > { %2323 = vrcp.f32 %v1420_v27 }
 0x689   : > { %v1577_v29 = vpop.permute.xlu0 %1576 }
 0x68d   : > { %v1575_v31 = vpop.permute.xlu0 %1574 }
 0x693   : > { %v2324_v28 = vpop.eup %2323 }
 0x694   : > { %v1422_v30 = vmul.f32 %v2324_v28, %v2322_v24 }
 0x696   : > { %2170 = vmatmul.mubr.msk.f32.vlgmr.msra.gmra.mxu1 %vm846_vm2, %v1422_v30 }
 0x697   : > { %2178 = vmatpush3.xpose.msk.msra.mxu1 %vm846_vm2, %v1577_v29  ;;  %2179 = vmatprep.mubr.msk.f32.mxu1 %vm2621_vm0, %v2620_v0 }
 0x698   : > { %2187 = vmatprep.subr.mxu1 %v2620_v0 }
 0x69a   : > { %2180 = vmatmul.mubr.msk.f32.vlgmr.msra.gmra.mxu1 %vm846_vm2, %v1575_v31 }
 0x69b   : > { %2189 = vmatprep.mubr.msk.f32.mxu1 %vm2621_vm0, %v2620_v0  ;;  %2188 = vmatpush3.msra.mxu1 %v1741_v44 }
 0x756   : > { %v1495_v21 = vpop.f32.mrf.mxu1 }
 0x757   : > { %2175 = vmatmul.mubr.msk.f32.vlgmr.msra.gmra.mxu0 %vm846_vm2, %v1495_v21 }
 0x758   : > { %v2171_v32 = vpop.f32.mrf.mxu1  ;;  %2184 = vmatprep.mubr.msk.f32.mxu0 %vm2621_vm0, %v2620_v0  ;;  %v1329_v0 = vadd.f32 %v1328_v10, %v1255_v12 }
 0x75a   : > { %v1648_v33 = vpop.f32.mrf.mxu1 }
 0x75b   : > { %v1652_v34 = vmul.f32 0.35355338, %v1648_v33 }
 0x75c   : > { %v2181_v35 = vpop.f32.mrf.mxu1 }
 0x75d   : > { %v1653_v37 = vsel %vm930_vm4, -1e+09, %v1652_v34 }
 0x75e   : > { %v1654_v38 = vsel %vm846_vm2, %v1653_v37, -inf }
 0x75f   : > { %1655 = vmax.xlane.f32.xlu0 %v1654_v38 }
 0x7e8   : > { %v1656_v39 = vpop.xlane.xlu0 %1655 }
 0x7e9   : > { %v1657_v40 = vsub.f32 %v1653_v37, %v1656_v39 }
 0x7eb   : > { %v1658_v41 = vmul.f32 1.442695, %v1657_v40 }
 0x7ed   : > { %2325 = vpow2.f32 %v1658_v41 }
 0x7fa   : > { %v2326_v42 = vpop.eup %2325 }
 0x7fb   : > { %v1660_v43 = vsel %vm846_vm2, %v2326_v42, 0.0 }
 0x7fc   : > { %1661 = vadd.xlane.f32.xlu1 %v1660_v43 }
 0x80d   : > { %1665 = vrot.lane.b32.xlu1 %v2966_v26, %s2625_s15 }
 0x817   : > { %v1569_v45 = vpop.f32.mrf.mxu0 }
 0x818   : > { %v1573_v36 = vadd.f32 %v1569_v45, %v1329_v0 }
 0x819   : > { %v2176_v46 = vpop.f32.mrf.mxu0 }
 0x885   : > { %v1662_v47 = vpop.xlane.xlu1 %1661 }
 0x886   : > { %2327 = vrcp.f32 %v1662_v47 }
 0x889   : > { %v1666_v48 = vpop.permute.xlu1 %1665 }
 0x88a   : > { %2183 = vmatpush3.msra.mxu0 %v1666_v48 }
 0x893   : > { %v2328_v49 = vpop.eup %2327 }
 0x894   : > { %v1664_v50 = vmul.f32 %v2328_v49, %v2326_v42 }
 0x896   : > { %2185 = vmatmul.mubr.msk.f32.vlgmr.msra.gmra.mxu0 %vm846_vm2, %v1664_v50 }
 0x956   : > { %v1737_v51 = vpop.f32.mrf.mxu0 }
 0x957   : > { %2190 = vmatmul.mubr.msk.f32.vlgmr.msra.gmra.mxu1 %vm846_vm2, %v1737_v51 }
 0x958   : > { %v2186_v26 = vpop.f32.mrf.mxu0 }
 0xa17   : > { %v1811_v52 = vpop.f32.mrf.mxu1 }
 0xa18   : > { %v1815_v54 = vadd.f32 %v1811_v52, %v1573_v36 }
 0xa19   : > { %v2191_v55 = vpop.f32.mrf.mxu1 }
 0xa1a   : > { %v1823_v56 = vadd.f32 %v2055_v53, %v1815_v54 }
 0xa1c   : > { %1824 = vst.msk [vmem:[%s585_s28] sm:$0xff] %vm604_vm1, %v1823_v56 }
 0xa1d   : > { %2530 = shalt.err (!%p2527_p8)
}
 0xa1e   : > { %s2531_s21 = scalar_lea.hbm %s1838_s4, 128  ;;  %s2535_s25 = scalar_lea.hbm %s3160_s20, 256 }
 0xa1f   : > { %p2532_p6 = scmp.ne.s32.totalorder %s1838_s4, %s2531_s21  ;;  %p2536_p13 = scmp.lt.s32.totalorder %s1838_s4, %s3160_s20 }
 0xa20   : > { %p2537_p9 = scmp.lt.s32.totalorder %s2535_s25, %s2531_s21 }
 0xa21   : > { %p2533_p3 = pnand %p2532_p6, %p3161_p2 }
 0xa22   : > { %p2538_p11 = por %p2537_p9, %p2536_p13 }
 0xa23   : > { %p2534_p0 = pneg %p2533_p3 }
 0xa25   : > { %p2539_p12 = pnand %p2538_p11, %p2534_p0 }
 0xa27   : > { %2542 = shalt.err (!%p2539_p12)
}
 0xa28   : > { %2214 = dma.vmem_to_hbm [thread:$0]  (%p3161_p2), %s1841_s27, 128, %s1838_s4, %s1826_s11  }
 0xa29 PF: > { %s3162_s15 = sld [smem:[#allocation20_spill]] }
 0xa2a   : > { %s3163_s18 = sld [smem:[#allocation26_spill]] }
 0xa2b   : > { %s3164_s5 = sld [smem:[#allocation22_spill]] }
 0xa2f   : > { %s1852_s6 = sand.u32 1, %s3162_s15  }
 0xa30   : > { %p3165_p5 = scmp.ne.s32.totalorder %s3163_s18, 0  ;;  %s1853_s12 = scalar_lea.sflag [#allocation4], %s1852_s6 }
 0xa31   : > { %p3166_p10 = scmp.ge.s32.totalorder %s3164_s5, 2 }
 0xa33   : > { %p2240_p1 = pnand %p3166_p10, %p3165_p5 }
 0xa35   : > { %p2241_p7 = pneg %p2240_p1 }
 0xa37   : > { %2584 = dma.done.wait (%p2241_p7), %s1853_s12, 128  }
 0xa38   : > { %2586 = vsyncadd (%p2241_p7), %s1853_s12, 4294967168  ;;  %s33_s26 = sadd.s32 1, %s3164_s5   ;;  %s3167_s28 = sld [smem:[#allocation25_spill]] }
 0xa39   : > { %p30_p4 = scmp.ge.s32.totalorder %s33_s26, 4   ;;  %s3168_s24 = sld [smem:[#allocation21_spill]] }
 0xa3a   : > { %s3169_s25 = sld [smem:[#allocation23_spill]]  ;;  %s3170_s21 = smov %s2593_s22 }
 0xa3b   : > { %s3171_s22 = smov %s2597_s23  ;;  %32 = sbr.rel (!%p30_p4) target bundleno = 18 (0x12), region = 156 }
 0xa3e   : > { %s3172_s23 = smov %s3167_s28 }
 0xa40   :  { %1858 = vsyncpa [#allocation3], 1 }
 0xa41   :  { %1860 = vsyncpa [#allocation3 + $0x1], 1 }
 0xa42   :  { %1861 = vsyncpa [#allocation6], 1 }
 0xa43   :  { %1863 = vsyncpa [#allocation6 + $0x1], 1 }
 0xa44   :  { %1864 = vsyncpa [#allocation9], 1 }
 0xa45   :  { %1865 = vsyncpa [#allocation12], 1 }
 0xa46   :  { %1866 = vsyncpa [#allocation4], 1 }
 0xa47   :  { %1868 = vsyncpa [#allocation4 + $0x1], 1 }

</bundles_post_ra>
